<compile_context>
chip_gen: v5e
topology: v5e:2x2
jax: 0.10.0
libtpu: 0.0.40
codegen_flags: <defaults>
</compile_context>

<pallas_src>
import functools

import jax
import jax.numpy as jnp
from jax import lax
from jax.experimental import pallas as pl
from jax.experimental.pallas import tpu as pltpu


def _conv1d_glu_kernel(x_ref, w1_ref, w2_ref, b1_ref, b2_ref, o_ref, *,
                       kernel_size):
    """One grid step = b_blk whole batch elements, native layout.

    x_ref : (b_blk, C_in, T)    input dtype (f32), native (N, C, T) layout
    w1_ref: (C_out, K*C_in)     bf16 im2col weight, GLU half 1 (col = j*C_in + c)
    w2_ref: (C_out, K*C_in)     bf16 im2col weight, GLU half 2
    b1_ref: (C_out, 1)          f32 bias, GLU half 1
    b2_ref: (C_out, 1)          f32 bias, GLU half 2
    o_ref : (b_blk, C_out, T)   output block (same dtype as input)
    """
    K = kernel_size
    pad = (K - 1) // 2
    B, C_in, T = x_ref.shape
    C_out = o_ref.shape[1]

    x = x_ref[...].astype(jnp.float32)              # exact f32 for the residual

    # "same"-padding conv taps: static lane shifts with zero fill. Built in
    # f32 (native 8-row sublane tiles) so the sublane concat needs no repack;
    # a single cast to bf16 afterwards feeds the MXU.
    taps = []
    for j in range(K):                              # K is a small static constant
        d = j - pad                                 # output[t] uses x[:, :, t + d]
        if d == 0:
            taps.append(x)
        elif d > 0:
            taps.append(jnp.concatenate(
                [x[:, :, d:], jnp.zeros((B, C_in, d), jnp.float32)], axis=2))
        else:
            taps.append(jnp.concatenate(
                [jnp.zeros((B, C_in, -d), jnp.float32), x[:, :, :T + d]], axis=2))
    rhs = jnp.concatenate(taps, axis=1).astype(jnp.bfloat16)   # (B, K*C_in, T)

    KC = K * C_in
    w1 = jnp.broadcast_to(w1_ref[...][None], (B, C_out, KC))   # bf16, shared weight
    w2 = jnp.broadcast_to(w2_ref[...][None], (B, C_out, KC))

    # One batched im2col MXU matmul per GLU half, f32 accumulation.
    x1 = jnp.einsum('bof,bft->bot', w1, rhs,
                    preferred_element_type=jnp.float32)
    x2 = jnp.einsum('bof,bft->bot', w2, rhs,
                    preferred_element_type=jnp.float32)
    x1 = x1 + b1_ref[...][None]                     # (1, C_out, 1) broadcast
    x2 = x2 + b2_ref[...][None]

    # GLU + residual in f32 (residual requires C_in == C_out).
    # TODO(synk): dropout is identity (PyTorch eval semantics); train-mode
    # dropout RNG is not implemented.
    glu = x1 * jax.nn.sigmoid(x2)
    o_ref[...] = (x + glu).astype(o_ref.dtype)


def _pick_batch_block(N, C_in, C_out, T, K, in_itemsize, out_itemsize):
    """Choose batch elements per grid step: big blocks, but keep a few steps."""
    # HBM bytes one batch element moves per step (x block read + out block write).
    io_per_b = C_in * T * in_itemsize + C_out * T * out_itemsize
    # Rough VMEM footprint per batch element in a block:
    #   double-buffered x/out blocks + f32 taps + bf16 rhs + x1/x2/glu temporaries.
    vmem_per_b = (2 * (C_in * T * 4 + C_out * T * 4)
                  + K * C_in * T * (4 + 2)
                  + 3 * C_out * T * 4)
    target_step_bytes = 2 << 20     # ~2 MiB HBM traffic / step: near roofline,
                                    # amortizes the ~0.35 us per-step overhead
    vmem_budget = 40 << 20          # leaves headroom inside v7x's 64 MiB VMEM
    b = min(target_step_bytes // io_per_b, vmem_budget // vmem_per_b)
    b = int(max(1, min(b, N)))
    # Keep at least min(N, 4) grid steps: pipeline overlap + both v7x cores.
    desired_steps = min(N, 4)
    if desired_steps > 0:
        b = min(b, pl.cdiv(N, desired_steps))
    return max(1, int(b))


def conv1d_glu(x, weight, bias, kernel_size):
    """Conv1dGLU forward (eval mode).

    x:      (N, C_in, T)
    weight: (2*C_out, C_in, K)  (PyTorch Conv1d layout)
    bias:   (2*C_out,)
    """
    N, C_in, T = x.shape
    K = kernel_size
    assert K % 2 == 1
    C2 = weight.shape[0]
    C_out = C2 // 2
    assert C_in == C_out, "residual connection requires in_channels == out_channels"

    # im2col weights: (2*C_out, C_in, K) -> (2*C_out, K*C_in), tap-major cols
    # (col = j*C_in + c), split into the two GLU halves. Tiny one-time relayout;
    # x and the output stay in their native layouts (no extra HBM passes).
    w_flat = jnp.transpose(weight, (0, 2, 1)).reshape(C2, K * C_in)
    w1 = w_flat[:C_out].astype(jnp.bfloat16)
    w2 = w_flat[C_out:].astype(jnp.bfloat16)
    b1 = bias[:C_out].reshape(C_out, 1).astype(jnp.float32)
    b2 = bias[C_out:].reshape(C_out, 1).astype(jnp.float32)

    out_dtype = x.dtype
    in_itemsize = jnp.dtype(x.dtype).itemsize
    out_itemsize = jnp.dtype(out_dtype).itemsize
    b_blk = _pick_batch_block(N, C_in, C_out, T, K, in_itemsize, out_itemsize)
    grid = (pl.cdiv(N, b_blk),)

    cost = pl.CostEstimate(
        flops=2 * N * T * C2 * (K * C_in),
        transcendentals=N * T * C_out,
        bytes_accessed=(N * C_in * T * in_itemsize       # x (native, read once)
                        + C2 * K * C_in * 2              # weights (bf16)
                        + C2 * 4                         # bias (f32)
                        + N * C_out * T * out_itemsize), # output
    )

    kernel = functools.partial(_conv1d_glu_kernel, kernel_size=K)
    return pl.pallas_call(
        kernel,
        out_shape=jax.ShapeDtypeStruct((N, C_out, T), out_dtype),
        grid=grid,
        in_specs=[
            pl.BlockSpec((b_blk, C_in, T), lambda i: (i, 0, 0)),     # x, native layout
            pl.BlockSpec((C_out, K * C_in), lambda i: (0, 0)),       # W1 (grid-invariant)
            pl.BlockSpec((C_out, K * C_in), lambda i: (0, 0)),       # W2 (grid-invariant)
            pl.BlockSpec((C_out, 1), lambda i: (0, 0)),              # b1
            pl.BlockSpec((C_out, 1), lambda i: (0, 0)),              # b2
        ],
        out_specs=pl.BlockSpec((b_blk, C_out, T), lambda i: (i, 0, 0)),
        compiler_params=pltpu.CompilerParams(
            dimension_semantics=("parallel",),
            vmem_limit_bytes=48 * 1024 * 1024),
        cost_estimate=cost,
    )(x, w1, w2, b1, b2)


def conv1d_glu_reference(x, weight, bias, kernel_size):
    """Pure-JAX f32 reference matching PyTorch Conv1dGLU.forward (eval mode)."""
    pad = (kernel_size - 1) // 2
    y = lax.conv_general_dilated(
        x, weight, window_strides=(1,), padding=[(pad, pad)],
        dimension_numbers=("NCH", "OIH", "NCH"),
    ) + bias[None, :, None]
    C_out = weight.shape[0] // 2
    x1, x2 = y[:, :C_out, :], y[:, C_out:, :]
    return x + x1 * jax.nn.sigmoid(x2)


if __name__ == "__main__":
    # Small deterministic setup: in_channels == out_channels == 8,
    # kernel_size = 3, batch = 2, time = 128.
    key = jax.random.PRNGKey(0)
    N, C, T, K = 2, 8, 128, 3
    dropout = 0.1  # unused at eval time

    kx, kw, kb = jax.random.split(key, 3)
    x = jax.random.normal(kx, (N, C, T), dtype=jnp.float32)

    # Deterministic init mimicking PyTorch Conv1d default: U(-bound, bound),
    # bound = 1/sqrt(fan_in) = 1/sqrt(C * K).
    bound = 1.0 / jnp.sqrt(jnp.float32(C * K))
    weight = jax.random.uniform(kw, (2 * C, C, K), jnp.float32, -bound, bound)
    bias = jax.random.uniform(kb, (2 * C,), jnp.float32, -bound, bound)

    out = conv1d_glu(x, weight, bias, K)
    out = jax.block_until_ready(out)

    ref = conv1d_glu_reference(x, weight, bias, K)
    assert out.shape == (N, C, T)
    # bf16 MXU operands (residual path stays exact f32) -> loose tolerance.
    assert jnp.allclose(out, ref, atol=2e-2, rtol=2e-2), "mismatch vs reference"

    print("KERNEL_OK")
</pallas_src>

<mosaic_0001>
module attributes {stable_mosaic.version = 11 : i64} {
  func.func @_conv1d_glu_kernel(%arg0: i32, %arg1: memref<1x8x128xf32, #tpu.memory_space<vmem>>, %arg2: memref<8x24xbf16, #tpu.memory_space<vmem>>, %arg3: memref<8x24xbf16, #tpu.memory_space<vmem>>, %arg4: memref<8x1xf32, #tpu.memory_space<vmem>>, %arg5: memref<8x1xf32, #tpu.memory_space<vmem>>, %arg6: memref<1x8x128xf32, #tpu.memory_space<vmem>>) attributes {dimension_semantics = [#tpu.dimension_semantics<parallel>], iteration_bounds = array<i64: 2>, scalar_prefetch = 0 : i64, scratch_operands = 0 : i64, tpu.core_type = #tpu.core_type<tc>, window_params = [{transform_indices = @transform_0, window_bounds = array<i64: 1, 8, 128>}, {pipeline_mode = #tpu.pipeline_mode<synchronous>, transform_indices = @transform_1, window_bounds = array<i64: 8, 24>}, {pipeline_mode = #tpu.pipeline_mode<synchronous>, transform_indices = @transform_2, window_bounds = array<i64: 8, 24>}, {pipeline_mode = #tpu.pipeline_mode<synchronous>, transform_indices = @transform_3, window_bounds = array<i64: 8, 1>}, {pipeline_mode = #tpu.pipeline_mode<synchronous>, transform_indices = @transform_4, window_bounds = array<i64: 8, 1>}, {transform_indices = @transform_5, window_bounds = array<i64: 1, 8, 128>}]} {
    %c0 = arith.constant 0 : index
    %c0_0 = arith.constant 0 : index
    %c0_1 = arith.constant 0 : index
    %0 = vector.load %arg1[%c0, %c0_0, %c0_1] : memref<1x8x128xf32, #tpu.memory_space<vmem>>, vector<1x8x128xf32>
    %cst = arith.constant 0.000000e+00 : f32
    %1 = vector.broadcast %cst : f32 to vector<1x8x1xf32>
    %2 = vector.extract_strided_slice %0 {offsets = [0, 0, 0], sizes = [1, 8, 127], strides = [1, 1, 1]} : vector<1x8x128xf32> to vector<1x8x127xf32>
    %3 = tpu.concatenate %1, %2 in 2 : vector<1x8x1xf32>, vector<1x8x127xf32> -> vector<1x8x128xf32>
    %4 = vector.extract_strided_slice %0 {offsets = [0, 0, 1], sizes = [1, 8, 127], strides = [1, 1, 1]} : vector<1x8x128xf32> to vector<1x8x127xf32>
    %cst_2 = arith.constant 0.000000e+00 : f32
    %5 = vector.broadcast %cst_2 : f32 to vector<1x8x1xf32>
    %6 = tpu.concatenate %4, %5 in 2 : vector<1x8x127xf32>, vector<1x8x1xf32> -> vector<1x8x128xf32>
    %7 = tpu.concatenate %3, %0, %6 in 1 : vector<1x8x128xf32>, vector<1x8x128xf32>, vector<1x8x128xf32> -> vector<1x24x128xf32>
    %8 = arith.truncf %7 : vector<1x24x128xf32> to vector<1x24x128xbf16>
    %c0_3 = arith.constant 0 : index
    %c0_4 = arith.constant 0 : index
    %9 = vector.load %arg2[%c0_3, %c0_4] : memref<8x24xbf16, #tpu.memory_space<vmem>>, vector<8x24xbf16>
    %10 = vector.shape_cast %9 : vector<8x24xbf16> to vector<1x8x24xbf16>
    %c0_5 = arith.constant 0 : index
    %c0_6 = arith.constant 0 : index
    %11 = vector.load %arg3[%c0_5, %c0_6] : memref<8x24xbf16, #tpu.memory_space<vmem>>, vector<8x24xbf16>
    %12 = vector.shape_cast %11 : vector<8x24xbf16> to vector<1x8x24xbf16>
    "tpu.trace_start"() <{level = 10 : i32, message = "bof,bft->bot"}> : () -> ()
    %cst_7 = arith.constant dense<0.000000e+00> : vector<1x8x128xf32>
    %13 = tpu.matmul %10, %8, %cst_7 {dimension_numbers = #tpu.dot_dimension_numbers<[2], [1], [1], [2], [0, 0, 0, 1, 1, 2], [0], [0]>} : vector<1x8x24xbf16>, vector<1x24x128xbf16>, vector<1x8x128xf32> -> vector<1x8x128xf32>
    %cst_8 = arith.constant dense<0.000000e+00> : vector<1x8x128xf32>
    %14 = tpu.matmul %12, %8, %cst_8 {dimension_numbers = #tpu.dot_dimension_numbers<[2], [1], [1], [2], [0, 0, 0, 1, 1, 2], [0], [0]>} : vector<1x8x24xbf16>, vector<1x24x128xbf16>, vector<1x8x128xf32> -> vector<1x8x128xf32>
    "tpu.trace_stop"() : () -> ()
    %c0_9 = arith.constant 0 : index
    %c0_10 = arith.constant 0 : index
    %15 = vector.load %arg4[%c0_9, %c0_10] : memref<8x1xf32, #tpu.memory_space<vmem>>, vector<8x1xf32>
    %16 = vector.shape_cast %15 : vector<8x1xf32> to vector<1x8x1xf32>
    %17 = vector.broadcast %16 : vector<1x8x1xf32> to vector<1x8x128xf32>
    %18 = arith.addf %13, %17 : vector<1x8x128xf32>
    %c0_11 = arith.constant 0 : index
    %c0_12 = arith.constant 0 : index
    %19 = vector.load %arg5[%c0_11, %c0_12] : memref<8x1xf32, #tpu.memory_space<vmem>>, vector<8x1xf32>
    %20 = vector.shape_cast %19 : vector<8x1xf32> to vector<1x8x1xf32>
    %21 = vector.broadcast %20 : vector<1x8x1xf32> to vector<1x8x128xf32>
    %22 = arith.addf %14, %21 : vector<1x8x128xf32>
    %23 = arith.negf %22 : vector<1x8x128xf32>
    %24 = math.exp %23 : vector<1x8x128xf32>
    %cst_13 = arith.constant 1.000000e+00 : f32
    %25 = vector.broadcast %cst_13 : f32 to vector<1x8x128xf32>
    %26 = arith.addf %25, %24 : vector<1x8x128xf32>
    %27 = arith.divf %25, %26 : vector<1x8x128xf32>
    %28 = arith.mulf %18, %27 : vector<1x8x128xf32>
    %29 = arith.addf %0, %28 : vector<1x8x128xf32>
    %c0_14 = arith.constant 0 : index
    %c0_15 = arith.constant 0 : index
    %c0_16 = arith.constant 0 : index
    %30 = vector.load %arg6[%c0_14, %c0_15, %c0_16] : memref<1x8x128xf32, #tpu.memory_space<vmem>>, vector<1x8x128xf32>
    tpu.vector_store %arg6[%c0_14, %c0_15, %c0_16], %29 {strides = array<i32>} : memref<1x8x128xf32, #tpu.memory_space<vmem>>, vector<1x8x128xf32>,
    return
  }
  func.func @transform_0(%arg0: i32) -> (i32, i32, i32) {
    %c0_i32 = arith.constant 0 : i32
    %c0_i32_0 = arith.constant 0 : i32
    %c0_i32_1 = arith.constant 0 : i32
    return %arg0, %c0_i32, %c0_i32_0 : i32, i32, i32
  }
  func.func @transform_1(%arg0: i32) -> (i32, i32) {
    %c0_i32 = arith.constant 0 : i32
    %c0_i32_0 = arith.constant 0 : i32
    %c0_i32_1 = arith.constant 0 : i32
    return %c0_i32, %c0_i32_0 : i32, i32
  }
  func.func @transform_2(%arg0: i32) -> (i32, i32) {
    %c0_i32 = arith.constant 0 : i32
    %c0_i32_0 = arith.constant 0 : i32
    %c0_i32_1 = arith.constant 0 : i32
    return %c0_i32, %c0_i32_0 : i32, i32
  }
  func.func @transform_3(%arg0: i32) -> (i32, i32) {
    %c0_i32 = arith.constant 0 : i32
    %c0_i32_0 = arith.constant 0 : i32
    %c0_i32_1 = arith.constant 0 : i32
    return %c0_i32, %c0_i32_0 : i32, i32
  }
  func.func @transform_4(%arg0: i32) -> (i32, i32) {
    %c0_i32 = arith.constant 0 : i32
    %c0_i32_0 = arith.constant 0 : i32
    %c0_i32_1 = arith.constant 0 : i32
    return %c0_i32, %c0_i32_0 : i32, i32
  }
  func.func @transform_5(%arg0: i32) -> (i32, i32, i32) {
    %c0_i32 = arith.constant 0 : i32
    %c0_i32_0 = arith.constant 0 : i32
    %c0_i32_1 = arith.constant 0 : i32
    return %arg0, %c0_i32, %c0_i32_0 : i32, i32, i32
  }
}

</mosaic_0001>

<bundles_post_ra>
// kernel: tpu_custom_call.1
= control target key start
LH: loop header
LB: loop body
LE: loop exit
PB: predicated region body
PF: predicated region fallthrough
CT: control target
= control target key end

     0   :  { %10 = vsyncpa [#allocation3], 0  ;;  %s821_s0 = inlined_call_operand.vmem [shape: f32[2,8,128], index: 0, kind: input, shape index: {}]   ;;  %s822_s1 = inlined_call_operand.hbm [shape: bf16[8,24], index: 1, kind: input, shape index: {}]   ;;  %s823_s2 = inlined_call_operand.hbm [shape: bf16[8,24], index: 2, kind: input, shape index: {}]   ;;  %s824_s3 = inlined_call_operand.vmem [shape: f32[8,1], index: 3, kind: input, shape index: {}]   ;;  %s825_s4 = inlined_call_operand.vmem [shape: f32[8,1], index: 4, kind: input, shape index: {}]   ;;  %s826_s5 = inlined_call_operand.hbm [shape: f32[2,8,128], index: 5, kind: output, shape index: {}]  }
   0x1   :  { %11 = vsyncpa [#allocation6], 0 }
   0x2   :  { %12 = vsyncpa [#allocation4], 0 }
   0x3   :  { %14 = vsyncpa [#allocation4 + $0x1], 0  ;;  %s698_s18 = smov 0   ;;  %s700_s19 = smov 0  }
   0x4   :  { %s702_s20 = smov 0   ;;  %s704_s21 = smov 0  }
   0x5 LB: > { %s719_s22 = sadd.s32 4294967295, %s661_s21   ;;  %s445_s23 = sadd.s32 4294967294, %s661_s21   ;;  %s661_s21 = sphi %s704_s21, %s833_s21   ;;  %s657_s20 = sphi %s702_s20, %s832_s20   ;;  %s653_s19 = sphi %s700_s19, %s831_s19   ;;  %s649_s18 = sphi %s698_s18, %s830_s18  }
   0x6   : > { %s723_s24 = sadd.s32 1, %s661_s21   ;;  %s137_s25 = sadd.s32 1, %s657_s20 }
   0x7   : > { %s134_s26 = ssub.s32 %s661_s21, %s723_s24  ;;  %p147_p0 = scmp.ne.s32.totalorder %s657_s20, %s653_s19 }
   0x8   : > { %p135_p1 = scmp.eq.s32.totalorder %s134_s26, 0  ;;  %p148_p2 = scmp.eq.s32.totalorder %s719_s22, 1 }
   0x9   : > { %p153_p3 = scmp.ne.s32.totalorder %s653_s19, %s649_s18  ;;  %p154_p4 = scmp.eq.s32.totalorder %s445_s23, 1 }
   0xa   : > { %s734_s27 = scalar_select %p135_p1, %s657_s20, %s137_s25  }
   0xb   : > { %p736_p5 = por %p148_p2, %p147_p0  ;;  %p740_p6 = por %p154_p4, %p153_p3 }
   0xc   : > { %p446_p7 = scmp.ge.s32.totalorder %s661_s21, 1  ;;  %p161_p8 = scmp.lt.s32.totalorder %s661_s21, 3 }
   0xd   : > { %p483_p9 = scmp.eq.s32.totalorder %s719_s22, 0  ;;  %s173_s8 = sshll.u32 %s822_s1, 4  ;;  %s174_s8 = int_to_ptr.hbm [resolvable:$true] %s173_s8 }
   0xe   : > { %p747_p10 = pnand %p446_p7, %p161_p8  ;;  %s663_s9 = smov [#allocation2]  }
   0xf   : > { %s175_s10 = sshll.u32 %s663_s9, 4  ;;  %s185_s13 = sshll.u32 %s823_s2, 4  ;;  %s176_s10 = int_to_ptr.vmem [resolvable:$true] %s175_s10  ;;  %s186_s13 = int_to_ptr.hbm [resolvable:$true] %s185_s13 }
  0x10   : > { %p472_p11 = pneg %p747_p10  ;;  %s664_s14 = smov [#allocation5]  }
  0x11   : > { %s187_s15 = sshll.u32 %s664_s14, 4  ;;  %213 = sbr.rel (%p747_p10) target bundleno = 328 (0x148), region = 40  ;;  %s188_s15 = int_to_ptr.vmem [resolvable:$true] %s187_s15 }
  0x12   : > { %p473_p12 = pnand %p483_p9, %p472_p11 }
  0x14   : > { %475 = dma.hbm_to_vmem [thread:$0]  (!%p473_p12), %s174_s8, 64, %s176_s10, [#allocation3]  }
  0x15   : > { %478 = dma.hbm_to_vmem [thread:$0]  (!%p473_p12), %s186_s13, 64, %s188_s15, [#allocation6]  }
  0x16   : > { %636 = dma.done.wait (%p483_p9), [#allocation3], 64  }
  0x17   : > { %638 = vsyncadd (%p483_p9), [#allocation3], 4294967232 }
  0x18   : > { %640 = dma.done.wait (%p483_p9), [#allocation6], 64  }
  0x19   : > { %642 = vsyncadd (%p483_p9), [#allocation6], 4294967232  ;;  %p246_p13 = scmp.lt.s32.totalorder %s719_s22, 1  ;;  %s665_s30 = smov 127   ;;  %v304_v1 = vld [vmem:[%s825_s4] sm:$0xff]  ;;  %v667_v2 = vmov 0  }
  0x1a   : > { %s666_s6 = smov 1   ;;  %525 = vset.pattern.permute.xlu1 %v667_v2  ;;  %526 = vset.pattern.permute.xlu0 %v667_v2  ;;  %v268_v3 = vld [vmem:[%s824_s3] sm:$0xff]  ;;  %vm261_vm0 = vcmask 1039360   ;;  %vm287_vm1 = vcmask 1043456   ;;  %vm256_vm2 = vcmask 7168   ;;  %vm283_vm3 = vcmask 195584  }
  0x1b   : > { %s247_s16 = scalar_select %p246_p13, %s719_s22, 1  ;;  %307 = vperm.xlu1 %525, %v304_v1   ;;  %v266_v17 = vld [vmem:[#allocation2] sm:$0xf]  ;;  %v267_v18 = vld [vmem:[#allocation5] sm:$0xf] }
  0x1c   : > { %s243_s11 = sand.u32 1, %s653_s19   ;;  %s459_s13 = sshll.u32 %s719_s22, 3 }
  0x1d   : > { %s454_s17 = sshll.u32 %s247_s16, 3  ;;  %s453_s12 = sshll.u32 %s243_s11, 3 }
  0x1e   : > { %s249_s26 = scalar_lea.vmem %s821_s0, %s454_s17  ;;  %s359_s16 = scalar_lea.hbm %s826_s5, %s459_s13 }
  0x1f   : > { %v776_v0 = vld [vmem:[%s249_s26] sm:$0xff]  ;;  %s245_s17 = scalar_lea.vmem [#allocation7], %s453_s12  ;;  %s363_s22 = sshll.u32 %s359_s16, 4  ;;  %s364_s22 = int_to_ptr.hbm [resolvable:$true] %s363_s22 }
  0x20   : > { %258 = vrot.lane.b32.xlu0 %v776_v0, %s665_s30  ;;  %v264_v9 = vpack.c.bf16 %v776_v0, %v776_v0  ;;  %s361_s23 = sshll.u32 %s245_s17, 4  ;;  %s349_s25 = scalar_lea.sflag [#allocation4], %s243_s11  ;;  %s362_s23 = int_to_ptr.vmem [resolvable:$true] %s361_s23 }
  0x21   : > { %s605_s26 = sshra.s32 %s364_s22, 4  ;;  %s611_s8 = scalar_lea.hbm %s826_s5, 16  ;;  %s606_s26 = int_to_ptr.hbm [resolvable:$true] %s605_s26 }
  0x22   : > { %v278_v14 = vunpack.c.l.b16 %v264_v9  ;;  %s607_s30 = scalar_lea.hbm %s606_s26, 8  ;;  %p612_p3 = scmp.lt.s32.totalorder %s606_s26, %s826_s5 }
  0x23   : > { %271 = vperm.xlu1 %525, %v268_v3   ;;  %p608_p0 = scmp.ne.s32.totalorder %s606_s26, %s607_s30  ;;  %p613_p4 = scmp.lt.s32.totalorder %s611_s8, %s607_s30 }
  0x25   : > { %p609_p1 = pnand %p608_p0, %p736_p5  ;;  %p614_p7 = por %p613_p4, %p612_p3 }
  0x27   : > { %p610_p2 = pneg %p609_p1 }
  0x28   : > { %253 = vrot.lane.b32.xlu0 %v776_v0, %s666_s6 }
  0x29   : > { %p615_p8 = pnand %p614_p7, %p610_p2 }
  0x8d   : > { %v308_v19 = vpop.permute.xlu1 %307 }
  0x92   : > { %v259_v4 = vpop.permute.xlu0 %258 }
  0x93   : > { %v262_v5 = vsel %vm261_vm0, %v259_v4, 0.0 }
  0x94   : > { %v265_v6 = vpack.c.bf16 %v262_v5, %v262_v5 }
  0x95   : > { %v272_v34 = vpop.permute.xlu1 %271 }
  0x96   : > { %v279_v7 = vunpack.c.l.b16 %v265_v6 }
  0x98   : > { %v281_v8 = vpack.c.b16 %v279_v7, %v279_v7 }
  0x9a   : > { %v254_v10 = vpop.permute.xlu0 %253  ;;  %v289_v11 = vsel %vm287_vm1, %v281_v8, 0 }
  0x9b   : > { %v257_v12 = vsel %vm256_vm2, 0.0, %v254_v10  ;;  %297 = vmatpush.bf16.msra.mxu0 %v289_v11  ;;  %319 = vmatpush.bf16.msra.mxu1 %v289_v11 }
  0x9c   : > { %v263_v13 = vpack.c.bf16 %v257_v12, %v257_v12 }
  0x9e   : > { %v277_v15 = vunpack.c.l.b16 %v263_v13 }
  0xa0   : > { %v280_v16 = vpack.c.b16 %v278_v14, %v277_v15 }
  0xa2   : > { %298 = vmatpush.bf16.msra.mxu0 %v280_v16  ;;  %320 = vmatpush.bf16.msra.mxu1 %v280_v16 }
  0xa5   : > { %455 = vmatmul.msk.bf16.vlgmr.msra.gmra.mxu0 %vm283_vm3, %v266_v17  ;;  %456 = vmatmul.msk.bf16.vlgmr.msra.gmra.mxu1 %vm283_vm3, %v267_v18 }
 0x122   : > { %v300_v20 = vpop.f32.mrf.mxu0  ;;  %v322_v21 = vpop.f32.mrf.mxu1 }
 0x123   : > { %v323_v22 = vadd.f32 %v322_v21, %v308_v19  ;;  %v301_v37 = vadd.f32 %v300_v20, %v272_v34 }
 0x125   : > { %v457_v23 = vmul.f32 -1.442695, %v323_v22 }
 0x127   : > { %527 = vpow2.f32 %v457_v23 }
 0x12a   : > { %v324_v24 = vpop.f32.mrf.mxu1  ;;  %v302_v25 = vpop.f32.mrf.mxu0 }
 0x12d   : > { %v528_v26 = vpop.eup %527 }
 0x12e   : > { %v329_v27 = vadd.f32 1.0, %v528_v26 }
 0x130   : > { %529 = vrcp.f32 %v329_v27  ;;  %v341_v31 = vand.u32 2147483648, %v329_v27  ;;  %v339_v33 = vand.u32 2147483647, %v329_v27  ;;  %vm335_vm5 = vweird.f32 %v329_v27 }
 0x132   : > { %v342_v36 = vor.u32 1.1754944e-38, %v341_v31  ;;  %vm340_vm7 = vcmp.eq.f32.partialorder %v339_v33, 8.507059e+37 }
 0x136   : > { %v530_v28 = vpop.eup %529 }
 0x137   : > { %v331_v29 = vmul.f32 %v530_v28, %v329_v27  ;;  %vm336_vm4 = vweird.f32 %v530_v28 }
 0x138   : > { %vm337_vm6 = vmor %vm335_vm5, %vm336_vm4 }
 0x139   : > { %v332_v30 = vsub.f32 1.0, %v331_v29 }
 0x13b   : > { %v333_v32 = vmul.f32 %v530_v28, %v332_v30 }
 0x13d   : > { %v334_v35 = vadd.f32 %v530_v28, %v333_v32 }
 0x13f   : > { %v338_v38 = vsel %vm337_vm6, %v530_v28, %v334_v35 }
 0x140   : > { %v343_v39 = vsel %vm340_vm7, %v342_v36, %v338_v38 }
 0x141   : > { %v345_v40 = vmul.f32 %v343_v39, %v301_v37 }
 0x143   : > { %v346_v41 = vadd.f32 %v345_v40, %v776_v0 }
 0x145   : > { %347 = vst [vmem:[%s245_s17] sm:$0xff] %v346_v41 }
 0x146   : > { %618 = shalt.err (!%p615_p8)
}
 0x147   : > { %470 = dma.vmem_to_hbm [thread:$0]  (%p736_p5), %s362_s23, 128, %s364_s22, %s349_s25  }
 0x148 PF: > { %p487_p9 = scmp.ge.s32.totalorder %s661_s21, 2  ;;  %s375_s11 = sand.u32 1, %s649_s18  }
 0x149   : > { %s376_s12 = scalar_lea.sflag [#allocation4], %s375_s11 }
 0x14a   : > { %p480_p10 = pnand %p487_p9, %p740_p6 }
 0x14c   : > { %p481_p11 = pneg %p480_p10 }
 0x14e   : > { %644 = dma.done.wait (%p481_p11), %s376_s12, 128  }
 0x14f   : > { %646 = vsyncadd (%p481_p11), %s376_s12, 4294967168  ;;  %p17_p12 = scmp.ge.s32.totalorder %s723_s24, 4   ;;  %s830_s18 = smov %s653_s19 }
 0x150   : > { %s831_s19 = smov %s657_s20  ;;  %s832_s20 = smov %s734_s27 }
 0x151   : > { %s833_s21 = smov %s723_s24  ;;  %19 = sbr.rel (!%p17_p12) target bundleno = 5 (0x5), region = 84 }
 0x156   :  { %382 = vsyncpa [#allocation3], 1 }
 0x157   :  { %384 = vsyncpa [#allocation3 + $0x1], 1 }
 0x158   :  { %385 = vsyncpa [#allocation6], 1 }
 0x159   :  { %386 = vsyncpa [#allocation4], 1 }
 0x15a   :  { %388 = vsyncpa [#allocation4 + $0x1], 1 }

</bundles_post_ra>
